<compile_context>
chip_gen: v7x
topology: tpu7x:2x2x1
jax: 0.10.0
libtpu: 0.0.40
codegen_flags: <defaults>
</compile_context>

<pallas_src>
import functools

import jax
import jax.numpy as jnp
from jax.experimental import pallas as pl
from jax.experimental.pallas import tpu as pltpu


def _round_up(x, m):
    return ((x + m - 1) // m) * m


def _fc_kernel(x_ref, w_ref, b_ref, o_ref, acc_ref, *, use_activation: bool):
    k = pl.program_id(2)

    @pl.when(k == 0)
    def _init():
        acc_ref[...] = jnp.zeros_like(acc_ref)

    x = x_ref[...]
    if use_activation:
        # tanh in f32 (EUP slot), then back to the input dtype so bf16
        # operands keep the MXU on its fast path.
        x = jnp.tanh(x.astype(jnp.float32)).astype(x_ref.dtype)

    acc_ref[...] += jnp.dot(x, w_ref[...], preferred_element_type=jnp.float32)

    @pl.when(k == pl.num_programs(2) - 1)
    def _finalize():
        o_ref[...] = (acc_ref[...] + b_ref[...].astype(jnp.float32)).astype(o_ref.dtype)


def prepare_fc_params(weight, bias):
    """One-time setup: PyTorch nn.Linear weight (out_dim, in_dim) -> (in_dim, out_dim)."""
    return weight.T, bias


def fc_layer(x, w_kn, bias, *, use_activation=True,
             block_m=256, block_n=256, block_k=512):
    """FCLayer forward: dropout(p=0) -> optional tanh -> x @ W + b.

    x: (M, K); w_kn: (K, N) (pre-transposed, see prepare_fc_params); bias: (N,).
    """
    M, K = x.shape
    K2, N = w_kn.shape
    assert K == K2 and bias.shape == (N,)

    # Tile sizes: clamp to (padded) array dims for small problems; defaults are
    # 256-multiples (v6e/v7x MXU native) that are also 128-aligned for v5e.
    tm = min(block_m, _round_up(M, 8))
    tn = min(block_n, _round_up(N, 128))
    tk = min(block_k, _round_up(K, 128))

    Mp, Np, Kp = _round_up(M, tm), _round_up(N, tn), _round_up(K, tk)

    # Zero-pad to tile multiples. Padded K contributes exactly 0 (tanh(0)=0 and
    # padded weight rows are 0); padded M rows / N cols are sliced off below.
    if (Mp, Kp) != (M, K):
        x = jnp.pad(x, ((0, Mp - M), (0, Kp - K)))
    if (Kp, Np) != (K, N):
        w_kn = jnp.pad(w_kn, ((0, Kp - K), (0, Np - N)))
    b2d = bias.reshape(1, N)
    if Np != N:
        b2d = jnp.pad(b2d, ((0, 0), (0, Np - N)))

    grid = (Mp // tm, Np // tn, Kp // tk)
    kernel = functools.partial(_fc_kernel, use_activation=use_activation)

    itemsize = jnp.dtype(x.dtype).itemsize
    flops = 2 * Mp * Np * Kp
    bytes_accessed = (x.size * itemsize
                      + w_kn.size * jnp.dtype(w_kn.dtype).itemsize
                      + b2d.size * jnp.dtype(b2d.dtype).itemsize
                      + Mp * Np * itemsize)

    out = pl.pallas_call(
        kernel,
        out_shape=jax.ShapeDtypeStruct((Mp, Np), x.dtype),
        grid_spec=pltpu.PrefetchScalarGridSpec(
            num_scalar_prefetch=0,
            grid=grid,
            in_specs=[
                pl.BlockSpec((tm, tk), lambda i, j, k: (i, k)),   # x tile
                pl.BlockSpec((tk, tn), lambda i, j, k: (k, j)),   # weight tile
                pl.BlockSpec((1, tn), lambda i, j, k: (0, j)),    # bias tile
            ],
            out_specs=pl.BlockSpec((tm, tn), lambda i, j, k: (i, j)),
            scratch_shapes=[pltpu.VMEM((tm, tn), jnp.float32)],
        ),
        compiler_params=pltpu.CompilerParams(
            dimension_semantics=("parallel", "parallel", "arbitrary")),
        cost_estimate=pl.CostEstimate(
            flops=flops,
            transcendentals=Mp * Kp if use_activation else 0,
            bytes_accessed=bytes_accessed),
    )(x, w_kn, b2d)

    if (Mp, Np) != (M, N):
        out = out[:M, :N]
    return out


def _init_linear_params(key, input_dim, output_dim, dtype=jnp.float32):
    # Deterministic init mimicking nn.Linear defaults: U(-1/sqrt(in), 1/sqrt(in)).
    kw, kb = jax.random.split(key)
    bound = 1.0 / (input_dim ** 0.5)
    weight = jax.random.uniform(kw, (output_dim, input_dim), dtype,
                                minval=-bound, maxval=bound)
    bias = jax.random.uniform(kb, (output_dim,), dtype,
                              minval=-bound, maxval=bound)
    return weight, bias


if __name__ == "__main__":
    key = jax.random.PRNGKey(0)
    kx, kp = jax.random.split(key)

    batch, input_dim, output_dim = 8, 32, 16
    x = jax.random.normal(kx, (batch, input_dim), jnp.float32)
    weight, bias = _init_linear_params(kp, input_dim, output_dim)

    # One-time parameter prep (transpose done outside the forward path).
    w_kn, bias = prepare_fc_params(weight, bias)

    out = fc_layer(x, w_kn, bias, use_activation=True)
    out = jax.block_until_ready(out)

    # Reference check in plain JAX (dropout p=0 -> identity).
    ref = jnp.tanh(x) @ weight.T + bias
    assert out.shape == (batch, output_dim)
    assert jnp.allclose(out, ref, atol=1e-5, rtol=1e-5), "mismatch vs reference"

    print("KERNEL_OK")
</pallas_src>

<mosaic_0001>
module attributes {stable_mosaic.version = 11 : i64} {
  func.func @_fc_kernel(%arg0: i32, %arg1: i32, %arg2: i32, %arg3: memref<8x128xf32, #tpu.memory_space<vmem>>, %arg4: memref<128x128xf32, #tpu.memory_space<vmem>>, %arg5: memref<1x128xf32, #tpu.memory_space<vmem>>, %arg6: memref<8x128xf32, #tpu.memory_space<vmem>>, %arg7: memref<8x128xf32, #tpu.memory_space<vmem>>) attributes {dimension_semantics = [#tpu.dimension_semantics<parallel>, #tpu.dimension_semantics<parallel>, #tpu.dimension_semantics<arbitrary>], iteration_bounds = array<i64: 1, 1, 1>, scalar_prefetch = 0 : i64, scratch_operands = 1 : i64, tpu.core_type = #tpu.core_type<tc>, window_params = [{transform_indices = @transform_0, window_bounds = array<i64: 8, 128>}, {transform_indices = @transform_1, window_bounds = array<i64: 128, 128>}, {transform_indices = @transform_2, window_bounds = array<i64: 1, 128>}, {transform_indices = @transform_3, window_bounds = array<i64: 8, 128>}]} {
    %c0_i32 = arith.constant 0 : i32
    %0 = arith.cmpi eq, %arg2, %c0_i32 : i32
    %1 = arith.extui %0 : i1 to i32
    %c0_i32_0 = arith.constant 0 : i32
    %2 = arith.cmpi ne, %1, %c0_i32_0 : i32
    scf.if %2 {
      %cst_10 = arith.constant 0.000000e+00 : f32
      %13 = vector.broadcast %cst_10 : f32 to vector<8x128xf32>
      %c0_11 = arith.constant 0 : index
      %c0_12 = arith.constant 0 : index
      %14 = vector.load %arg7[%c0_11, %c0_12] : memref<8x128xf32, #tpu.memory_space<vmem>>, vector<8x128xf32>
      tpu.vector_store %arg7[%c0_11, %c0_12], %13 {strides = array<i32>} : memref<8x128xf32, #tpu.memory_space<vmem>>, vector<8x128xf32>,
    } else {
    }
    %c0 = arith.constant 0 : index
    %c0_1 = arith.constant 0 : index
    %3 = vector.load %arg3[%c0, %c0_1] : memref<8x128xf32, #tpu.memory_space<vmem>>, vector<8x128xf32>
    %4 = math.tanh %3 : vector<8x128xf32>
    %c0_2 = arith.constant 0 : index
    %c0_3 = arith.constant 0 : index
    %5 = vector.load %arg7[%c0_2, %c0_3] : memref<8x128xf32, #tpu.memory_space<vmem>>, vector<8x128xf32>
    %c0_4 = arith.constant 0 : index
    %c0_5 = arith.constant 0 : index
    %6 = vector.load %arg4[%c0_4, %c0_5] : memref<128x128xf32, #tpu.memory_space<vmem>>, vector<128x128xf32>
    %cst = arith.constant dense<0.000000e+00> : vector<8x128xf32>
    %7 = tpu.matmul %4, %6, %cst {dimension_numbers = #tpu.dot_dimension_numbers<[1], [0], [0], [1], [0, 0, 1, 1], [], []>} : vector<8x128xf32>, vector<128x128xf32>, vector<8x128xf32> -> vector<8x128xf32>
    %8 = arith.addf %5, %7 : vector<8x128xf32>
    %c0_6 = arith.constant 0 : index
    %c0_7 = arith.constant 0 : index
    %9 = vector.load %arg7[%c0_6, %c0_7] : memref<8x128xf32, #tpu.memory_space<vmem>>, vector<8x128xf32>
    tpu.vector_store %arg7[%c0_6, %c0_7], %8 {strides = array<i32>} : memref<8x128xf32, #tpu.memory_space<vmem>>, vector<8x128xf32>,
    %c0_i32_8 = arith.constant 0 : i32
    %10 = arith.cmpi eq, %arg2, %c0_i32_8 : i32
    %11 = arith.extui %10 : i1 to i32
    %c0_i32_9 = arith.constant 0 : i32
    %12 = arith.cmpi ne, %11, %c0_i32_9 : i32
    scf.if %12 {
      %c0_10 = arith.constant 0 : index
      %c0_11 = arith.constant 0 : index
      %13 = vector.load %arg7[%c0_10, %c0_11] : memref<8x128xf32, #tpu.memory_space<vmem>>, vector<8x128xf32>
      %c0_12 = arith.constant 0 : index
      %c0_13 = arith.constant 0 : index
      %14 = vector.load %arg5[%c0_12, %c0_13] : memref<1x128xf32, #tpu.memory_space<vmem>>, vector<1x128xf32>
      %15 = vector.broadcast %14 : vector<1x128xf32> to vector<8x128xf32>
      %16 = arith.addf %13, %15 : vector<8x128xf32>
      %c0_14 = arith.constant 0 : index
      %c0_15 = arith.constant 0 : index
      %17 = vector.load %arg6[%c0_14, %c0_15] : memref<8x128xf32, #tpu.memory_space<vmem>>, vector<8x128xf32>
      tpu.vector_store %arg6[%c0_14, %c0_15], %16 {strides = array<i32>} : memref<8x128xf32, #tpu.memory_space<vmem>>, vector<8x128xf32>,
    } else {
    }
    return
  }
  func.func @transform_0(%arg0: i32, %arg1: i32, %arg2: i32) -> (i32, i32) {
    %c0_i32 = arith.constant 0 : i32
    return %arg0, %arg2 : i32, i32
  }
  func.func @transform_1(%arg0: i32, %arg1: i32, %arg2: i32) -> (i32, i32) {
    %c0_i32 = arith.constant 0 : i32
    return %arg2, %arg1 : i32, i32
  }
  func.func @transform_2(%arg0: i32, %arg1: i32, %arg2: i32) -> (i32, i32) {
    %c0_i32 = arith.constant 0 : i32
    %c0_i32_0 = arith.constant 0 : i32
    return %c0_i32, %arg1 : i32, i32
  }
  func.func @transform_3(%arg0: i32, %arg1: i32, %arg2: i32) -> (i32, i32) {
    %c0_i32 = arith.constant 0 : i32
    return %arg0, %arg1 : i32, i32
  }
}

</mosaic_0001>

<bundles_post_ra>
// kernel: tpu_custom_call.1
= control target key start
LH: loop header
LB: loop body
LE: loop exit
PB: predicated region body
PF: predicated region fallthrough
CT: control target
= control target key end

     0   :  { %8 = vsyncpa [#allocation4], 0  ;;  %s399_s0 = inlined_call_operand.hbm [shape: f32[8,128], index: 0, kind: input, shape index: {}]   ;;  %s400_s1 = inlined_call_operand.hbm [shape: f32[128,128], index: 1, kind: input, shape index: {}]   ;;  %s401_s2 = inlined_call_operand.vmem [shape: f32[1,128], index: 2, kind: input, shape index: {}]   ;;  %s402_s3 = inlined_call_operand.hbm [shape: f32[8,128], index: 3, kind: output, shape index: {}]  }
   0x1   :  { %9 = vsyncpa [#allocation7], 0 }
   0x2   :  { %10 = vsyncpa [#allocation5], 0  ;;  %s325_s12 = smov [#allocation3]   ;;  %s326_s14 = smov [#allocation6]  }
   0x3   :  { %s17_s13 = sshll.u32 %s325_s12, 4  ;;  %s26_s15 = sshll.u32 %s326_s14, 4  ;;  %s18_s13 = int_to_ptr.vmem [resolvable:$true] %s17_s13  ;;  %s353_s15 = int_to_ptr.vmem [resolvable:$true] %s26_s15 }
   0x4   :  { %s253_s18 = scalar_lea.hbm %s399_s0, 128 }
   0x5   :  { %p254_p0 = scmp.ne.s32.totalorder %s399_s0, %s253_s18  ;;  %p257_p1 = scmp.lt.u32.totalorder %s253_s18, %s399_s0 }
   0x7   :  { %p259_p2 = pnand %p257_p1, %p254_p0 }
   0x9   :  { %262 = shalt.err (!%p259_p2)
}
   0xa   :  { %s263_s23 = scalar_lea.vmem %s18_s13, 128  ;;  %p268_p4 = scmp.lt.s32.totalorder %s18_s13, %s18_s13 }
   0xb   :  { %p264_p3 = scmp.ne.s32.totalorder %s18_s13, %s263_s23  ;;  %p269_p5 = scmp.lt.s32.totalorder %s263_s23, %s263_s23 }
   0xd   :  { %p270_p6 = por %p269_p5, %p268_p4 }
   0xf   :  { %p271_p7 = pnand %p270_p6, %p264_p3 }
  0x11   :  { %274 = shalt.err (!%p271_p7)
}
  0x12   :  { %20 = dma.hbm_to_vmem [thread:$0]  %s399_s0, 128, %s18_s13, [#allocation4]  }
  0x13   :  { %s275_s28 = scalar_lea.hbm %s400_s1, 2048 }
  0x14   :  { %p276_p8 = scmp.ne.s32.totalorder %s400_s1, %s275_s28  ;;  %p279_p9 = scmp.lt.u32.totalorder %s275_s28, %s400_s1 }
  0x16   :  { %p281_p10 = pnand %p279_p9, %p276_p8 }
  0x18   :  { %284 = shalt.err (!%p281_p10)
}
  0x19   :  { %s285_s6 = scalar_lea.vmem %s353_s15, 2048  ;;  %p290_p12 = scmp.lt.s32.totalorder %s353_s15, %s353_s15 }
  0x1a   :  { %p286_p11 = scmp.ne.s32.totalorder %s353_s15, %s285_s6  ;;  %p291_p13 = scmp.lt.s32.totalorder %s285_s6, %s285_s6 }
  0x1c   :  { %p292_p0 = por %p291_p13, %p290_p12 }
  0x1e   :  { %p293_p1 = pnand %p292_p0, %p286_p11 }
  0x20   :  { %296 = shalt.err (!%p293_p1)
}
  0x21   :  { %s327_s0 = smov 128   ;;  %s328_s7 = smov 8  }
  0x22   :  { %32 = dma.hbm_to_vmem [thread:$0]  %s400_s1, 2048, %s353_s15, [#allocation7], %s327_s0, %s327_s0, %s328_s7  }
  0x23   :  { %319 = dma.done.wait [#allocation4], 128  }
  0x24   :  { %320 = vsyncadd [#allocation4], 4294967168 }
  0x25   :  { %321 = dma.done.wait [#allocation7], 2048  }
  0x26   :  { %322 = vsyncadd [#allocation7], 4294965248  ;;  %v329_v0 = vmov 0.0|0.0   ;;  %vm330_vm0 = vmmov 0   ;;  %v331_v1 = vmov 0.0   ;;  %v49_v2 = vld [vmem:[#allocation6] sm:$0xff] }
  0x27   :  { %219 = vmatprep.subr.bf16.mxu0 %v329_v0  ;;  %216 = vmatprep.mubr.msk.f32.mxu0 %vm330_vm0, %v331_v1  ;;  %v50_v3 = vld [vmem:[#allocation6 + $0x8] sm:$0xff]  ;;  %v51_v4 = vld [vmem:[#allocation6 + $0x10] sm:$0xff]  ;;  %v52_v6 = vld [vmem:[#allocation6 + $0x18] sm:$0xff]  ;;  %s332_s11 = smov [#allocation8]  }
  0x28   :  { %v220_v5 = vpack.c.bf16 %v50_v3, %v49_v2  ;;  %v223_v7 = vpack.c.bf16 %v52_v6, %v51_v4  ;;  %v53_v8 = vld [vmem:[#allocation6 + $0x20] sm:$0xff]  ;;  %v54_v9 = vld [vmem:[#allocation6 + $0x28] sm:$0xff]  ;;  %v55_v11 = vld [vmem:[#allocation6 + $0x30] sm:$0xff]  ;;  %s156_s12 = sshll.u32 %s332_s11, 4  ;;  %s157_s12 = int_to_ptr.vmem [resolvable:$true] %s156_s12 }
  0x29   :  { %v226_v10 = vpack.c.bf16 %v54_v9, %v53_v8  ;;  %v56_v12 = vld [vmem:[#allocation6 + $0x38] sm:$0xff]  ;;  %v57_v14 = vld [vmem:[#allocation6 + $0x40] sm:$0xff]  ;;  %v58_v15 = vld [vmem:[#allocation6 + $0x48] sm:$0xff]  ;;  %s297_s13 = scalar_lea.vmem %s157_s12, 128  ;;  %p302_p3 = scmp.lt.s32.totalorder %s157_s12, %s157_s12 }
  0x2a   :  { %221 = vmatpush3.bf16.msra.mxu0 %v220_v5  ;;  %v229_v13 = vpack.c.bf16 %v56_v12, %v55_v11  ;;  %v232_v16 = vpack.c.bf16 %v58_v15, %v57_v14  ;;  %v59_v17 = vld [vmem:[#allocation6 + $0x50] sm:$0xff]  ;;  %v60_v18 = vld [vmem:[#allocation6 + $0x58] sm:$0xff]  ;;  %v61_v21 = vld [vmem:[#allocation6 + $0x60] sm:$0xff]  ;;  %p298_p2 = scmp.ne.s32.totalorder %s157_s12, %s297_s13  ;;  %p303_p4 = scmp.lt.s32.totalorder %s297_s13, %s297_s13 }
  0x2b   :  { %222 = vmatprep.subr.bf16.mxu0 %v329_v0  ;;  %v46_v19 = vld [vmem:[#allocation3] sm:$0xff]  ;;  %v235_v20 = vpack.c.bf16 %v60_v18, %v59_v17  ;;  %v62_v22 = vld [vmem:[#allocation6 + $0x68] sm:$0xff]  ;;  %v63_v24 = vld [vmem:[#allocation6 + $0x70] sm:$0xff] }
  0x2c   :  { %251 = vtanh.f32 %v46_v19  ;;  %v238_v23 = vpack.c.bf16 %v62_v22, %v61_v21  ;;  %v64_v25 = vld [vmem:[#allocation6 + $0x78] sm:$0xff]  ;;  %p304_p5 = por %p303_p4, %p302_p3 }
  0x2d   :  { %v241_v26 = vpack.c.bf16 %v64_v25, %v63_v24  ;;  %v166_v28 = vld [vmem:[%s401_s2] ss:$0 sm:$0xff] }
  0x2e   :  { %224 = vmatpush3.bf16.msra.mxu0 %v223_v7  ;;  %p305_p6 = pnand %p304_p5, %p298_p2 }
  0x2f   :  { %225 = vmatprep.subr.bf16.mxu0 %v329_v0 }
  0x32   :  { %227 = vmatpush3.bf16.msra.mxu0 %v226_v10 }
  0x33   :  { %228 = vmatprep.subr.bf16.mxu0 %v329_v0 }
  0x36   :  { %230 = vmatpush3.bf16.msra.mxu0 %v229_v13  ;;  %v252_v27 = vpop.eup %251 }
  0x37   :  { %231 = vmatprep.subr.bf16.mxu0 %v329_v0 }
  0x3a   :  { %233 = vmatpush3.bf16.msra.mxu0 %v232_v16 }
  0x3b   :  { %234 = vmatprep.subr.bf16.mxu0 %v329_v0 }
  0x3e   :  { %236 = vmatpush3.bf16.msra.mxu0 %v235_v20 }
  0x3f   :  { %237 = vmatprep.subr.bf16.mxu0 %v329_v0 }
  0x42   :  { %239 = vmatpush3.bf16.msra.mxu0 %v238_v23 }
  0x43   :  { %240 = vmatprep.subr.bf16.mxu0 %v329_v0 }
  0x46   :  { %242 = vmatpush3.bf16.msra.mxu0 %v241_v26 }
  0x49   :  { %217 = vmatmul.mubr.f32.vlgmr.msra.gmra.mrb[0].mxu0 %v252_v27 }
 0x11c   :  { %v131_v29 = vpop.f32.mrb[0].mxu0 }
 0x11d   :  { %v148_v30 = vadd.f32 %v166_v28, %v131_v29  ;;  %v218_v31 = vpop.f32.mrb[1].mxu0 }
 0x11f   :  { %149 = vst [vmem:[#allocation8] sm:$0xff] %v148_v30 }
 0x120   :  { %308 = shalt.err (!%p305_p6)
}
 0x121   :  { %s309_s16 = scalar_lea.hbm %s402_s3, 128 }
 0x122   :  { %p310_p7 = scmp.ne.s32.totalorder %s402_s3, %s309_s16  ;;  %p313_p8 = scmp.lt.u32.totalorder %s309_s16, %s402_s3 }
 0x124   :  { %p315_p9 = pnand %p313_p8, %p310_p7 }
 0x126   :  { %318 = shalt.err (!%p315_p9)
}
 0x127   :  { %159 = dma.vmem_to_hbm [thread:$0]  %s157_s12, 128, %s402_s3, [#allocation5]  }
 0x128   :  { %323 = dma.done.wait [#allocation5], 128  }
 0x129   :  { %324 = vsyncadd [#allocation5], 4294967168 }
 0x12a   :  { %163 = vsyncpa [#allocation4], 1 }
 0x12b   :  { %164 = vsyncpa [#allocation7], 1 }
 0x12c   :  { %165 = vsyncpa [#allocation5], 1 }

</bundles_post_ra>
